<compile_context>
chip_gen: v7x
topology: tpu7x:2x2x1
jax: 0.10.0
libtpu: 0.0.40
codegen_flags: <defaults>
</compile_context>

<pallas_src>
import math

import jax
import jax.numpy as jnp
from jax.experimental import pallas as pl
from jax.experimental.pallas import tpu as pltpu


_SQRT_2_OVER_PI = math.sqrt(2.0 / math.pi)


def _gelu_kernel(x_ref, o_ref):
    # Upcast to f32 so bf16 inputs get f32-accurate tanh-GELU; the extra casts
    # are free (kernel is HBM bound, VPU/EUP slots have slack).
    x = x_ref[...].astype(jnp.float32)
    inner = _SQRT_2_OVER_PI * (x + 0.044715 * (x * x * x))
    y = 0.5 * x * (1.0 + jnp.tanh(inner))
    o_ref[...] = y.astype(o_ref.dtype)


def _lane_dense_2d_shape(total, hidden):
    """Pick (rows, lane_width) with lane_width a big multiple of 128 if possible."""
    for lane in (4096, 2048, 1024, 512, 256, 128):
        if total % lane == 0:
            return total // lane, lane
    # Fall back to the original hidden dim (may be narrow / non-128-multiple).
    return total // hidden, hidden


def gelu_pallas(x, *, row_tile=None, donate=False):
    orig_shape = x.shape
    total = x.size
    itemsize = jnp.dtype(x.dtype).itemsize

    rows, lane = _lane_dense_2d_shape(total, orig_shape[-1])
    x2d = x.reshape(rows, lane)

    # Minimum sublane granularity for this dtype (f32: 8, bf16: 16, int8: 32).
    min_sub = 8 * max(1, 4 // itemsize)

    if row_tile is None:
        # Target ~8 MiB per block; in+out each double-buffered => ~32 MiB VMEM.
        target_block_bytes = 8 << 20
        row_tile = max(min_sub, target_block_bytes // (lane * itemsize))

    if rows <= row_tile:
        tile_r = rows  # single block; block dim == full array dim is always legal
        grid = (1,)
    else:
        tile_r = max(min_sub, (row_tile // min_sub) * min_sub)
        grid = (pl.cdiv(rows, tile_r),)  # ragged last block handled by Pallas

    cost = pl.CostEstimate(
        flops=10 * total,
        transcendentals=total,
        bytes_accessed=2 * total * itemsize,
    )

    out2d = pl.pallas_call(
        _gelu_kernel,
        out_shape=jax.ShapeDtypeStruct((rows, lane), x.dtype),
        grid_spec=pltpu.PrefetchScalarGridSpec(
            num_scalar_prefetch=0,
            grid=grid,
            in_specs=[pl.BlockSpec((tile_r, lane), lambda i: (i, 0))],
            out_specs=pl.BlockSpec((tile_r, lane), lambda i: (i, 0)),
        ),
        compiler_params=pltpu.CompilerParams(
            dimension_semantics=("parallel",),  # shards grid across v7x's 2 TCs
            vmem_limit_bytes=48 << 20,          # <= v7x's 64 MiB physical VMEM
        ),
        cost_estimate=cost,
        # Donate the input buffer so no second full-size activation is
        # allocated in HBM. Off by default so callers may keep using `x`
        # after an eager (non-jit) call.
        input_output_aliases=({0: 0} if donate else {}),
    )(x2d)

    return out2d.reshape(orig_shape)


def gelu_ref(x):
    c = math.sqrt(2.0 / math.pi)
    return 0.5 * x * (1.0 + jnp.tanh(c * (x + 0.044715 * jnp.power(x, 3))))


if __name__ == "__main__":
    key = jax.random.PRNGKey(0)
    k1, k2, k3 = jax.random.split(key, 3)

    # 1) Small GPT-2-ish shape (batch=2, seq=8, hidden=32), f32, single block.
    x1 = jax.random.normal(k1, (2, 8, 32), dtype=jnp.float32)
    y1 = gelu_pallas(x1)
    jax.block_until_ready(y1)
    r1 = gelu_ref(x1)
    assert y1.shape == x1.shape and y1.dtype == x1.dtype
    assert jnp.max(jnp.abs(y1 - r1)) < 1e-5

    # 2) Multi-tile path with a ragged last block (rows=15, tile_r=8 -> grid=2).
    x2 = jax.random.normal(k2, (3, 10, 128), dtype=jnp.float32)
    y2 = gelu_pallas(x2, row_tile=8)
    jax.block_until_ready(y2)
    r2 = gelu_ref(x2)
    assert y2.shape == x2.shape
    assert jnp.max(jnp.abs(y2 - r2)) < 1e-5

    # 3) bf16 input: kernel upcasts to f32 internally, casts back on the store.
    x3 = jax.random.normal(k3, (2, 8, 32), dtype=jnp.bfloat16)
    r3 = gelu_ref(x3.astype(jnp.float32))  # compute reference before donating
    y3 = gelu_pallas(x3, donate=True)
    jax.block_until_ready(y3)
    assert y3.dtype == jnp.bfloat16 and y3.shape == x3.shape
    assert jnp.max(jnp.abs(y3.astype(jnp.float32) - r3)) < 3e-2

    print("KERNEL_OK")
</pallas_src>

<mosaic_0001>
module attributes {stable_mosaic.version = 11 : i64} {
  func.func @_gelu_kernel(%arg0: i32, %arg1: memref<1x512xf32, #tpu.memory_space<vmem>>, %arg2: memref<1x512xf32, #tpu.memory_space<vmem>>) attributes {dimension_semantics = [#tpu.dimension_semantics<parallel>], iteration_bounds = array<i64: 1>, scalar_prefetch = 0 : i64, scratch_operands = 0 : i64, tpu.core_type = #tpu.core_type<tc>, window_params = [{transform_indices = @transform_0, window_bounds = array<i64: 1, 512>}, {transform_indices = @transform_1, window_bounds = array<i64: 1, 512>}]} {
    %c0 = arith.constant 0 : index
    %c0_0 = arith.constant 0 : index
    %0 = vector.load %arg1[%c0, %c0_0] : memref<1x512xf32, #tpu.memory_space<vmem>>, vector<1x512xf32>
    %1 = arith.mulf %0, %0 : vector<1x512xf32>
    %2 = arith.mulf %1, %0 : vector<1x512xf32>
    %cst = arith.constant 4.471500e-02 : f32
    %3 = vector.broadcast %cst : f32 to vector<1x512xf32>
    %4 = arith.mulf %3, %2 : vector<1x512xf32>
    %5 = arith.addf %0, %4 : vector<1x512xf32>
    %cst_1 = arith.constant 0.797884583 : f32
    %6 = vector.broadcast %cst_1 : f32 to vector<1x512xf32>
    %7 = arith.mulf %6, %5 : vector<1x512xf32>
    %cst_2 = arith.constant 5.000000e-01 : f32
    %8 = vector.broadcast %cst_2 : f32 to vector<1x512xf32>
    %9 = arith.mulf %8, %0 : vector<1x512xf32>
    %10 = math.tanh %7 : vector<1x512xf32>
    %cst_3 = arith.constant 1.000000e+00 : f32
    %11 = vector.broadcast %cst_3 : f32 to vector<1x512xf32>
    %12 = arith.addf %11, %10 : vector<1x512xf32>
    %13 = arith.mulf %9, %12 : vector<1x512xf32>
    %c0_4 = arith.constant 0 : index
    %c0_5 = arith.constant 0 : index
    %14 = vector.load %arg2[%c0_4, %c0_5] : memref<1x512xf32, #tpu.memory_space<vmem>>, vector<1x512xf32>
    tpu.vector_store %arg2[%c0_4, %c0_5], %13 {strides = array<i32>} : memref<1x512xf32, #tpu.memory_space<vmem>>, vector<1x512xf32>,
    return
  }
  func.func @transform_0(%arg0: i32) -> (i32, i32) {
    %c0_i32 = arith.constant 0 : i32
    %c0_i32_0 = arith.constant 0 : i32
    return %arg0, %c0_i32 : i32, i32
  }
  func.func @transform_1(%arg0: i32) -> (i32, i32) {
    %c0_i32 = arith.constant 0 : i32
    %c0_i32_0 = arith.constant 0 : i32
    return %arg0, %c0_i32 : i32, i32
  }
}

</mosaic_0001>

<bundles_post_ra>
// kernel: tpu_custom_call.1
= control target key start
LH: loop header
LB: loop body
LE: loop exit
PB: predicated region body
PF: predicated region fallthrough
CT: control target
= control target key end

     0   :  { %6 = vsyncpa [#allocation3], 0  ;;  %s139_s0 = inlined_call_operand.hbm [shape: f32[1,512], index: 0, kind: input, shape index: {}]   ;;  %s140_s1 = inlined_call_operand.hbm [shape: f32[1,512], index: 1, kind: output, shape index: {}]  }
   0x1   :  { %7 = vsyncpa [#allocation4], 0  ;;  %s103_s6 = smov [#allocation2]   ;;  %s55_s10 = scalar_lea.hbm %s139_s0, 64 }
   0x2   :  { %s14_s7 = sshll.u32 %s103_s6, 4  ;;  %p56_p0 = scmp.ne.s32.totalorder %s139_s0, %s55_s10  ;;  %s15_s7 = int_to_ptr.vmem [resolvable:$true] %s14_s7 }
   0x3   :  { %p59_p1 = scmp.lt.u32.totalorder %s55_s10, %s139_s0 }
   0x5   :  { %p61_p2 = pnand %p59_p1, %p56_p0 }
   0x7   :  { %64 = shalt.err (!%p61_p2)
}
   0x8   :  { %s65_s15 = scalar_lea.vmem %s15_s7, 64  ;;  %p70_p4 = scmp.lt.s32.totalorder %s15_s7, %s15_s7 }
   0x9   :  { %p66_p3 = scmp.ne.s32.totalorder %s15_s7, %s65_s15  ;;  %p71_p5 = scmp.lt.s32.totalorder %s65_s15, %s65_s15 }
   0xb   :  { %p72_p6 = por %p71_p5, %p70_p4 }
   0xd   :  { %p73_p7 = pnand %p72_p6, %p66_p3 }
   0xf   :  { %76 = shalt.err (!%p73_p7)
}
  0x10   :  { %17 = dma.hbm_to_vmem [thread:$0]  %s139_s0, 64, %s15_s7, [#allocation3]  }
  0x11   :  { %99 = dma.done.wait [#allocation3], 64  }
  0x12   :  { %100 = vsyncadd [#allocation3], 4294967232  ;;  %v21_v0 = vld [vmem:[#allocation2] sm:$0xf]  ;;  %v31_v6 = vlaneseq  ;;  %s104_s18 = smov [#allocation5]  }
  0x13   :  { %v22_v1 = vmul.f32 %v21_v0, %v21_v0  ;;  %v27_v7 = vmul.f32 0.5, %v21_v0  ;;  %s42_s19 = sshll.u32 %s104_s18, 4  ;;  %s43_s19 = int_to_ptr.vmem [resolvable:$true] %s42_s19 }
  0x14   :  { %vm33_vm0 = vcmp.lt.s32.totalorder %v31_v6, 512  ;;  %s77_s0 = scalar_lea.vmem %s43_s19, 64  ;;  %p82_p9 = scmp.lt.s32.totalorder %s43_s19, %s43_s19 }
  0x15   :  { %v23_v2 = vmul.f32 %v22_v1, %v21_v0  ;;  %p78_p8 = scmp.ne.s32.totalorder %s43_s19, %s77_s0  ;;  %p83_p10 = scmp.lt.s32.totalorder %s77_s0, %s77_s0 }
  0x17   :  { %v24_v3 = vmul.f32 0.044715, %v23_v2  ;;  %p84_p11 = por %p83_p10, %p82_p9 }
  0x19   :  { %v25_v4 = vadd.f32 %v24_v3, %v21_v0  ;;  %p85_p12 = pnand %p84_p11, %p78_p8 }
  0x1b   :  { %v26_v5 = vmul.f32 0.7978846, %v25_v4 }
  0x1d   :  { %53 = vtanh.f32 %v26_v5 }
  0x27   :  { %v54_v8 = vpop.eup %53 }
  0x28   :  { %v29_v9 = vadd.f32 1.0, %v54_v8 }
  0x2a   :  { %v30_v10 = vmul.f32 %v29_v9, %v27_v7 }
  0x2c   :  { %35 = vst.msk [vmem:[#allocation5] sm:$0xf] %vm33_vm0, %v30_v10 }
  0x2d   :  { %88 = shalt.err (!%p85_p12)
}
  0x2e   :  { %s89_s22 = scalar_lea.hbm %s140_s1, 64 }
  0x2f   :  { %p90_p13 = scmp.ne.s32.totalorder %s140_s1, %s89_s22  ;;  %p93_p0 = scmp.lt.u32.totalorder %s89_s22, %s140_s1 }
  0x31   :  { %p95_p1 = pnand %p93_p0, %p90_p13 }
  0x33   :  { %98 = shalt.err (!%p95_p1)
}
  0x34   :  { %45 = dma.vmem_to_hbm [thread:$0]  %s43_s19, 64, %s140_s1, [#allocation4]  }
  0x35   :  { %101 = dma.done.wait [#allocation4], 64  }
  0x36   :  { %102 = vsyncadd [#allocation4], 4294967232 }
  0x37   :  { %49 = vsyncpa [#allocation3], 1 }
  0x38   :  { %50 = vsyncpa [#allocation4], 1 }

</bundles_post_ra>
